<compile_context>
chip_gen: v7x
topology: tpu7x:2x2x1
jax: 0.10.0
libtpu: 0.0.40
codegen_flags: <defaults>
</compile_context>

<pallas_src>
import functools
import math

import jax
import jax.numpy as jnp
import numpy as np
from jax.experimental import pallas as pl
from jax.experimental.pallas import tpu as pltpu


# ------------------------------ shared helpers ----------------------------- #

def _layer_norm(v, g, b, eps=1e-5):
    mu = jnp.mean(v, axis=-1, keepdims=True)
    var = jnp.mean((v - mu) ** 2, axis=-1, keepdims=True)
    return (v - mu) * jax.lax.rsqrt(var + eps) * g + b


# ------------------------------ Pallas kernel ------------------------------ #

def encoder_layer_kernel(n_heads, head_dim,
                         x_ref, bias_ref,
                         wqkv_ref, bqkv_ref, wo_ref, bo_ref,
                         ln1g_ref, ln1b_ref,
                         w1_ref, b1_ref, w2_ref, b2_ref,
                         ln2g_ref, ln2b_ref,
                         out_ref):
    """One grid step == one EncoderLayer applied to one batch element's
    resident (S, H) activation (kept in the revisited output block)."""
    layer = pl.program_id(1)
    nh, hd = n_heads, head_dim
    cdt = w1_ref.dtype          # MXU operand dtype (f32 or bf16); accum is f32

    # Seed the resident activation at the first layer.  (Output blocks are not
    # pre-loaded from HBM, so the aliased input must be copied in explicitly.)
    @pl.when(layer == 0)
    def _():
        out_ref[...] = x_ref[...]

    x = out_ref[...]                                            # (S, H) f32

    # ---- fused Q/K/V projection (1/sqrt(hd) folded into Wq/bq on host) ----
    qkv = jnp.dot(x.astype(cdt), wqkv_ref[0],
                  preferred_element_type=jnp.float32) + bqkv_ref[0]   # (S, 3H)

    # Head split: static lane slices stacked on a leading head axis.  (At
    # realistic hd (multiple of 128) these slices are lane-tile aligned and
    # essentially free.)
    heads = jnp.stack([qkv[:, i * hd:(i + 1) * hd] for i in range(3 * nh)],
                      axis=0)                                   # (3*nh, S, hd)
    q_h = heads[:nh].astype(cdt)
    k_h = heads[nh:2 * nh].astype(cdt)
    v_h = heads[2 * nh:].astype(cdt)

    # ---- per-head attention as batched einsums (f32 accumulation) ----
    energy = jnp.einsum('hqd,hkd->hqk', q_h, k_h,
                        preferred_element_type=jnp.float32)     # (nh, S, S)
    energy = energy + bias_ref[...]                             # additive mask
    m = jnp.max(energy, axis=-1, keepdims=True)
    p = jnp.exp(energy - m)
    denom = jnp.sum(p, axis=-1, keepdims=True)
    attn = p * pl.reciprocal(denom, approx=True)                # EUP reciprocal
    ctx = jnp.einsum('hqk,hkd->hqd', attn.astype(cdt), v_h,
                     preferred_element_type=jnp.float32)        # (nh, S, hd)

    # ---- output projection: one dense (S,H)@(H,H) GEMM ----
    ctx2d = jnp.concatenate([ctx[h] for h in range(nh)], axis=-1)  # (S, H)
    attn_out = jnp.dot(ctx2d.astype(cdt), wo_ref[0],
                       preferred_element_type=jnp.float32) + bo_ref[0]

    # ---- residual + LayerNorm 1 (f32) ----
    x1 = _layer_norm(x + attn_out, ln1g_ref[0], ln1b_ref[0])

    # ---- position-wise feed-forward ----
    hid = jnp.maximum(
        jnp.dot(x1.astype(cdt), w1_ref[0],
                preferred_element_type=jnp.float32) + b1_ref[0], 0.0)
    ff = jnp.dot(hid.astype(cdt), w2_ref[0],
                 preferred_element_type=jnp.float32) + b2_ref[0]

    # ---- residual + LayerNorm 2 -> becomes the next layer's input ----
    out_ref[...] = _layer_norm(x1 + ff, ln2g_ref[0], ln2b_ref[0])


# ------------------------------ host-side glue ----------------------------- #

def pack_encoder_params(params, compute_dtype=jnp.float32):
    """Stack per-layer weights along a leading layer axis; fuse QKV; fold the
    1/sqrt(head_dim) scale; cast the big matmul weights to `compute_dtype`
    (biases / LayerNorm params stay f32)."""
    layers = params["layers"]
    H = params["tok_emb"].shape[1]
    nh = params["n_heads"]
    hd = H // nh
    inv = 1.0 / math.sqrt(hd)
    cdt = compute_dtype

    def stk(name, dtype=jnp.float32):
        return jnp.stack([lp[name] for lp in layers]).astype(dtype)

    return {
        "tok_emb": params["tok_emb"],
        "pos_emb": params["pos_emb"],
        # Columns ordered [q_h0..q_h{nh-1} | k_h0.. | v_h0..]; scale folded in.
        "wqkv": jnp.stack([jnp.concatenate(
            [lp["wq"] * inv, lp["wk"], lp["wv"]], axis=1)
            for lp in layers]).astype(cdt),                      # (L, H, 3H)
        "bqkv": jnp.stack([jnp.concatenate(
            [lp["bq"] * inv, lp["bk"], lp["bv"]], axis=1)
            for lp in layers]).astype(jnp.float32),              # (L, 1, 3H)
        "wo": stk("wo", cdt),                                    # (L, H, H) dense
        "bo": stk("bo"),
        "ln1_g": stk("ln1_g"), "ln1_b": stk("ln1_b"),
        "w1": stk("w1", cdt), "b1": stk("b1"),
        "w2": stk("w2", cdt), "b2": stk("b2"),
        "ln2_g": stk("ln2_g"), "ln2_b": stk("ln2_b"),
    }


@functools.partial(jax.jit, static_argnames=("n_heads",))
def encoder_forward(src, src_mask, pp, *, n_heads):
    """src: int32 [B, S], src_mask: float32 [B, 1, S] -> float32 [B, S, H]."""
    B, S = src.shape
    H = pp["tok_emb"].shape[1]
    nh = n_heads
    hd = H // nh
    L = pp["wqkv"].shape[0]
    PF = pp["w1"].shape[2]

    # Embedding lookup + positional embedding in plain JAX (gather).
    pos = jnp.arange(S)
    x = pp["tok_emb"][src] * math.sqrt(H) + pp["pos_emb"][pos][None, :, :]
    x2d = x.astype(jnp.float32).reshape(B * S, H)

    # Additive attention-mask bias: 0 where attendable, -1e10 where masked.
    bias = jnp.where(src_mask == 0.0, -1e10, 0.0).astype(jnp.float32)  # (B,1,S)

    in_specs = [
        pl.BlockSpec((S, H), lambda b, l: (b, 0)),             # x seed (aliased)
        pl.BlockSpec((1, 1, S), lambda b, l: (b, 0, 0)),       # additive mask bias
        pl.BlockSpec((1, H, 3 * H), lambda b, l: (l, 0, 0)),   # wqkv
        pl.BlockSpec((1, 1, 3 * H), lambda b, l: (l, 0, 0)),   # bqkv
        pl.BlockSpec((1, H, H), lambda b, l: (l, 0, 0)),       # wo (dense)
        pl.BlockSpec((1, 1, H), lambda b, l: (l, 0, 0)),       # bo
        pl.BlockSpec((1, 1, H), lambda b, l: (l, 0, 0)),       # ln1 gamma
        pl.BlockSpec((1, 1, H), lambda b, l: (l, 0, 0)),       # ln1 beta
        pl.BlockSpec((1, H, PF), lambda b, l: (l, 0, 0)),      # w1
        pl.BlockSpec((1, 1, PF), lambda b, l: (l, 0, 0)),      # b1
        pl.BlockSpec((1, PF, H), lambda b, l: (l, 0, 0)),      # w2
        pl.BlockSpec((1, 1, H), lambda b, l: (l, 0, 0)),       # b2
        pl.BlockSpec((1, 1, H), lambda b, l: (l, 0, 0)),       # ln2 gamma
        pl.BlockSpec((1, 1, H), lambda b, l: (l, 0, 0)),       # ln2 beta
    ]

    kernel = functools.partial(encoder_layer_kernel, nh, hd)
    out2d = pl.pallas_call(
        kernel,
        out_shape=jax.ShapeDtypeStruct((B * S, H), jnp.float32),
        grid_spec=pltpu.PrefetchScalarGridSpec(
            num_scalar_prefetch=0,
            grid=(B, L),                       # batch parallel, layers sequential
            in_specs=in_specs,
            out_specs=pl.BlockSpec((S, H), lambda b, l: (b, 0)),  # resident act.
        ),
        input_output_aliases={0: 0},           # write back into the x2d buffer
        compiler_params=pltpu.CompilerParams(
            dimension_semantics=("parallel", "arbitrary"),
            vmem_limit_bytes=32 * 1024 * 1024),
    )(x2d, bias,
      pp["wqkv"], pp["bqkv"], pp["wo"], pp["bo"],
      pp["ln1_g"], pp["ln1_b"], pp["w1"], pp["b1"],
      pp["w2"], pp["b2"], pp["ln2_g"], pp["ln2_b"])

    return out2d.reshape(B, S, H)


# ------------------------------ pure-JAX reference ------------------------- #

def encoder_layer_ref(x, mask, p, n_heads):
    B, S, H = x.shape
    hd = H // n_heads
    q = (x @ p["wq"] + p["bq"]).reshape(B, S, n_heads, hd).transpose(0, 2, 1, 3)
    k = (x @ p["wk"] + p["bk"]).reshape(B, S, n_heads, hd).transpose(0, 2, 1, 3)
    v = (x @ p["wv"] + p["bv"]).reshape(B, S, n_heads, hd).transpose(0, 2, 1, 3)
    energy = (q @ k.transpose(0, 1, 3, 2)) / math.sqrt(hd)        # (B, nh, S, S)
    energy = jnp.where(mask[:, :, None, :] == 0.0, -1e10, energy)
    attn = jax.nn.softmax(energy, axis=-1)
    ctx = (attn @ v).transpose(0, 2, 1, 3).reshape(B, S, H)
    a = ctx @ p["wo"] + p["bo"]
    x1 = _layer_norm(x + a, p["ln1_g"], p["ln1_b"])
    ff = jnp.maximum(x1 @ p["w1"] + p["b1"], 0.0) @ p["w2"] + p["b2"]
    return _layer_norm(x1 + ff, p["ln2_g"], p["ln2_b"])


def encoder_ref(src, src_mask, params):
    B, S = src.shape
    H = params["tok_emb"].shape[1]
    pos = jnp.arange(S)
    x = params["tok_emb"][src] * math.sqrt(H) + params["pos_emb"][pos][None, :, :]
    for lp in params["layers"]:
        x = encoder_layer_ref(x, src_mask, lp, params["n_heads"])
    return x


# ------------------------------ parameter init ----------------------------- #

def init_params(key, input_dim, hid_dim, n_layers, n_heads, pf_dim, max_length=100):
    k_tok, k_pos, *k_layers = jax.random.split(key, 2 + n_layers)
    params = {
        "n_heads": n_heads,
        "tok_emb": 0.02 * jax.random.normal(k_tok, (input_dim, hid_dim), jnp.float32),
        "pos_emb": 0.02 * jax.random.normal(k_pos, (max_length, hid_dim), jnp.float32),
        "layers": [],
    }
    for kl in k_layers:
        ks = jax.random.split(kl, 6)
        lp = {
            "wq": 0.05 * jax.random.normal(ks[0], (hid_dim, hid_dim), jnp.float32),
            "wk": 0.05 * jax.random.normal(ks[1], (hid_dim, hid_dim), jnp.float32),
            "wv": 0.05 * jax.random.normal(ks[2], (hid_dim, hid_dim), jnp.float32),
            "wo": 0.05 * jax.random.normal(ks[3], (hid_dim, hid_dim), jnp.float32),
            "bq": jnp.zeros((1, hid_dim), jnp.float32),
            "bk": jnp.zeros((1, hid_dim), jnp.float32),
            "bv": jnp.zeros((1, hid_dim), jnp.float32),
            "bo": jnp.zeros((1, hid_dim), jnp.float32),
            "ln1_g": jnp.ones((1, hid_dim), jnp.float32),
            "ln1_b": jnp.zeros((1, hid_dim), jnp.float32),
            "w1": 0.05 * jax.random.normal(ks[4], (hid_dim, pf_dim), jnp.float32),
            "b1": jnp.zeros((1, pf_dim), jnp.float32),
            "w2": 0.05 * jax.random.normal(ks[5], (pf_dim, hid_dim), jnp.float32),
            "b2": jnp.zeros((1, hid_dim), jnp.float32),
            "ln2_g": jnp.ones((1, hid_dim), jnp.float32),
            "ln2_b": jnp.zeros((1, hid_dim), jnp.float32),
        }
        params["layers"].append(lp)
    return params


# ----------------------------------- main ---------------------------------- #

if __name__ == "__main__":
    B, S = 2, 8
    input_dim, hid_dim, n_layers, n_heads, pf_dim = 50, 32, 2, 4, 64

    key = jax.random.PRNGKey(0)
    k_param, k_src = jax.random.split(key)
    params = init_params(k_param, input_dim, hid_dim, n_layers, n_heads, pf_dim)

    src = jax.random.randint(k_src, (B, S), 0, input_dim, dtype=jnp.int32)
    src_mask = jnp.ones((B, 1, S), jnp.float32)  # all positions attendable

    ref = jax.block_until_ready(encoder_ref(src, src_mask, params))

    # f32 MXU operands: near-exact vs the pure-JAX reference.
    packed_f32 = pack_encoder_params(params, jnp.float32)
    out_f32 = jax.block_until_ready(
        encoder_forward(src, src_mask, packed_f32, n_heads=n_heads))
    np.testing.assert_allclose(np.asarray(out_f32), np.asarray(ref),
                               rtol=1e-3, atol=2e-3)

    # bf16 MXU operands (recommended on v5e/v6e/v7x), f32 accumulation.
    packed_bf16 = pack_encoder_params(params, jnp.bfloat16)
    out_bf16 = jax.block_until_ready(
        encoder_forward(src, src_mask, packed_bf16, n_heads=n_heads))
    np.testing.assert_allclose(np.asarray(out_bf16), np.asarray(ref),
                               rtol=2e-2, atol=2e-2)

    print("KERNEL_OK")
</pallas_src>

<mosaic_0001>
module attributes {stable_mosaic.version = 11 : i64} {
  func.func @encoder_layer_kernel(%arg0: i32, %arg1: i32, %arg2: memref<8x32xf32, #tpu.memory_space<vmem>>, %arg3: memref<1x1x8xf32, #tpu.memory_space<vmem>>, %arg4: memref<1x32x96xf32, #tpu.memory_space<vmem>>, %arg5: memref<1x1x96xf32, #tpu.memory_space<vmem>>, %arg6: memref<1x32x32xf32, #tpu.memory_space<vmem>>, %arg7: memref<1x1x32xf32, #tpu.memory_space<vmem>>, %arg8: memref<1x1x32xf32, #tpu.memory_space<vmem>>, %arg9: memref<1x1x32xf32, #tpu.memory_space<vmem>>, %arg10: memref<1x32x64xf32, #tpu.memory_space<vmem>>, %arg11: memref<1x1x64xf32, #tpu.memory_space<vmem>>, %arg12: memref<1x64x32xf32, #tpu.memory_space<vmem>>, %arg13: memref<1x1x32xf32, #tpu.memory_space<vmem>>, %arg14: memref<1x1x32xf32, #tpu.memory_space<vmem>>, %arg15: memref<1x1x32xf32, #tpu.memory_space<vmem>>, %arg16: memref<8x32xf32, #tpu.memory_space<vmem>>) attributes {dimension_semantics = [#tpu.dimension_semantics<parallel>, #tpu.dimension_semantics<arbitrary>], iteration_bounds = array<i64: 2, 2>, scalar_prefetch = 0 : i64, scratch_operands = 0 : i64, tpu.core_type = #tpu.core_type<tc>, window_params = [{transform_indices = @transform_0, window_bounds = array<i64: 8, 32>}, {transform_indices = @transform_1, window_bounds = array<i64: 1, 1, 8>}, {transform_indices = @transform_2, window_bounds = array<i64: 1, 32, 96>}, {transform_indices = @transform_3, window_bounds = array<i64: 1, 1, 96>}, {transform_indices = @transform_4, window_bounds = array<i64: 1, 32, 32>}, {transform_indices = @transform_5, window_bounds = array<i64: 1, 1, 32>}, {transform_indices = @transform_6, window_bounds = array<i64: 1, 1, 32>}, {transform_indices = @transform_7, window_bounds = array<i64: 1, 1, 32>}, {transform_indices = @transform_8, window_bounds = array<i64: 1, 32, 64>}, {transform_indices = @transform_9, window_bounds = array<i64: 1, 1, 64>}, {transform_indices = @transform_10, window_bounds = array<i64: 1, 64, 32>}, {transform_indices = @transform_11, window_bounds = array<i64: 1, 1, 32>}, {transform_indices = @transform_12, window_bounds = array<i64: 1, 1, 32>}, {transform_indices = @transform_13, window_bounds = array<i64: 1, 1, 32>}, {transform_indices = @transform_14, window_bounds = array<i64: 8, 32>}]} {
    %c0_i32 = arith.constant 0 : i32
    %0 = arith.cmpi eq, %arg1, %c0_i32 : i32
    %1 = arith.extui %0 : i1 to i32
    %c0_i32_0 = arith.constant 0 : i32
    %2 = arith.cmpi ne, %1, %c0_i32_0 : i32
    scf.if %2 {
      %c0_61 = arith.constant 0 : index
      %c0_62 = arith.constant 0 : index
      %141 = vector.load %arg2[%c0_61, %c0_62] : memref<8x32xf32, #tpu.memory_space<vmem>>, vector<8x32xf32>
      %c0_63 = arith.constant 0 : index
      %c0_64 = arith.constant 0 : index
      %142 = vector.load %arg16[%c0_63, %c0_64] : memref<8x32xf32, #tpu.memory_space<vmem>>, vector<8x32xf32>
      tpu.vector_store %arg16[%c0_63, %c0_64], %141 {strides = array<i32>} : memref<8x32xf32, #tpu.memory_space<vmem>>, vector<8x32xf32>,
    } else {
    }
    %c0 = arith.constant 0 : index
    %c0_1 = arith.constant 0 : index
    %3 = vector.load %arg16[%c0, %c0_1] : memref<8x32xf32, #tpu.memory_space<vmem>>, vector<8x32xf32>
    %c0_2 = arith.constant 0 : index
    %c0_3 = arith.constant 0 : index
    %c0_4 = arith.constant 0 : index
    %4 = vector.load %arg4[%c0_2, %c0_3, %c0_4] : memref<1x32x96xf32, #tpu.memory_space<vmem>>, vector<1x32x96xf32>
    %5 = vector.shape_cast %4 : vector<1x32x96xf32> to vector<32x96xf32>
    %cst = arith.constant dense<0.000000e+00> : vector<8x96xf32>
    %6 = tpu.matmul %3, %5, %cst {dimension_numbers = #tpu.dot_dimension_numbers<[1], [0], [0], [1], [0, 0, 1, 1], [], []>} : vector<8x32xf32>, vector<32x96xf32>, vector<8x96xf32> -> vector<8x96xf32>
    %c0_5 = arith.constant 0 : index
    %c0_6 = arith.constant 0 : index
    %c0_7 = arith.constant 0 : index
    %7 = vector.load %arg5[%c0_5, %c0_6, %c0_7] : memref<1x1x96xf32, #tpu.memory_space<vmem>>, vector<1x1x96xf32>
    %8 = vector.shape_cast %7 : vector<1x1x96xf32> to vector<1x96xf32>
    %9 = vector.broadcast %8 : vector<1x96xf32> to vector<8x96xf32>
    %10 = arith.addf %6, %9 : vector<8x96xf32>
    %11 = vector.extract_strided_slice %10 {offsets = [0, 0], sizes = [8, 8], strides = [1, 1]} : vector<8x96xf32> to vector<8x8xf32>
    %12 = vector.extract_strided_slice %10 {offsets = [0, 8], sizes = [8, 8], strides = [1, 1]} : vector<8x96xf32> to vector<8x8xf32>
    %13 = vector.extract_strided_slice %10 {offsets = [0, 16], sizes = [8, 8], strides = [1, 1]} : vector<8x96xf32> to vector<8x8xf32>
    %14 = vector.extract_strided_slice %10 {offsets = [0, 24], sizes = [8, 8], strides = [1, 1]} : vector<8x96xf32> to vector<8x8xf32>
    %15 = vector.extract_strided_slice %10 {offsets = [0, 32], sizes = [8, 8], strides = [1, 1]} : vector<8x96xf32> to vector<8x8xf32>
    %16 = vector.extract_strided_slice %10 {offsets = [0, 40], sizes = [8, 8], strides = [1, 1]} : vector<8x96xf32> to vector<8x8xf32>
    %17 = vector.extract_strided_slice %10 {offsets = [0, 48], sizes = [8, 8], strides = [1, 1]} : vector<8x96xf32> to vector<8x8xf32>
    %18 = vector.extract_strided_slice %10 {offsets = [0, 56], sizes = [8, 8], strides = [1, 1]} : vector<8x96xf32> to vector<8x8xf32>
    %19 = vector.extract_strided_slice %10 {offsets = [0, 64], sizes = [8, 8], strides = [1, 1]} : vector<8x96xf32> to vector<8x8xf32>
    %20 = vector.extract_strided_slice %10 {offsets = [0, 72], sizes = [8, 8], strides = [1, 1]} : vector<8x96xf32> to vector<8x8xf32>
    %21 = vector.extract_strided_slice %10 {offsets = [0, 80], sizes = [8, 8], strides = [1, 1]} : vector<8x96xf32> to vector<8x8xf32>
    %22 = vector.extract_strided_slice %10 {offsets = [0, 88], sizes = [8, 8], strides = [1, 1]} : vector<8x96xf32> to vector<8x8xf32>
    %23 = vector.shape_cast %11 : vector<8x8xf32> to vector<1x8x8xf32>
    %24 = vector.shape_cast %12 : vector<8x8xf32> to vector<1x8x8xf32>
    %25 = vector.shape_cast %13 : vector<8x8xf32> to vector<1x8x8xf32>
    %26 = vector.shape_cast %14 : vector<8x8xf32> to vector<1x8x8xf32>
    %27 = vector.shape_cast %15 : vector<8x8xf32> to vector<1x8x8xf32>
    %28 = vector.shape_cast %16 : vector<8x8xf32> to vector<1x8x8xf32>
    %29 = vector.shape_cast %17 : vector<8x8xf32> to vector<1x8x8xf32>
    %30 = vector.shape_cast %18 : vector<8x8xf32> to vector<1x8x8xf32>
    %31 = vector.shape_cast %19 : vector<8x8xf32> to vector<1x8x8xf32>
    %32 = vector.shape_cast %20 : vector<8x8xf32> to vector<1x8x8xf32>
    %33 = vector.shape_cast %21 : vector<8x8xf32> to vector<1x8x8xf32>
    %34 = vector.shape_cast %22 : vector<8x8xf32> to vector<1x8x8xf32>
    %35 = tpu.concatenate %23, %24, %25, %26, %27, %28, %29, %30, %31, %32, %33, %34 in 0 : vector<1x8x8xf32>, vector<1x8x8xf32>, vector<1x8x8xf32>, vector<1x8x8xf32>, vector<1x8x8xf32>, vector<1x8x8xf32>, vector<1x8x8xf32>, vector<1x8x8xf32>, vector<1x8x8xf32>, vector<1x8x8xf32>, vector<1x8x8xf32>, vector<1x8x8xf32> -> vector<12x8x8xf32>
    %36 = vector.extract_strided_slice %35 {offsets = [0, 0, 0], sizes = [4, 8, 8], strides = [1, 1, 1]} : vector<12x8x8xf32> to vector<4x8x8xf32>
    %37 = vector.extract_strided_slice %35 {offsets = [4, 0, 0], sizes = [4, 8, 8], strides = [1, 1, 1]} : vector<12x8x8xf32> to vector<4x8x8xf32>
    %38 = vector.extract_strided_slice %35 {offsets = [8, 0, 0], sizes = [4, 8, 8], strides = [1, 1, 1]} : vector<12x8x8xf32> to vector<4x8x8xf32>
    "tpu.trace_start"() <{level = 10 : i32, message = "hqd,hkd->hqk"}> : () -> ()
    %cst_8 = arith.constant dense<0.000000e+00> : vector<4x8x8xf32>
    %39 = tpu.matmul %36, %37, %cst_8 {dimension_numbers = #tpu.dot_dimension_numbers<[2], [2], [1], [1], [0, 0, 0, 1, 1, 1], [0], [0]>} : vector<4x8x8xf32>, vector<4x8x8xf32>, vector<4x8x8xf32> -> vector<4x8x8xf32>
    "tpu.trace_stop"() : () -> ()
    %c0_9 = arith.constant 0 : index
    %c0_10 = arith.constant 0 : index
    %c0_11 = arith.constant 0 : index
    %40 = vector.load %arg3[%c0_9, %c0_10, %c0_11] : memref<1x1x8xf32, #tpu.memory_space<vmem>>, vector<1x1x8xf32>
    %41 = vector.broadcast %40 : vector<1x1x8xf32> to vector<4x8x8xf32>
    %42 = arith.addf %39, %41 : vector<4x8x8xf32>
    %cst_12 = arith.constant dense<0xFF800000> : vector<4x8xf32>
    %43 = vector.multi_reduction <maximumf>, %42, %cst_12 [2] : vector<4x8x8xf32> to vector<4x8xf32>
    %44 = vector.shape_cast %43 : vector<4x8xf32> to vector<4x8x1xf32>
    %45 = vector.broadcast %44 : vector<4x8x1xf32> to vector<4x8x8xf32>
    %46 = arith.subf %42, %45 : vector<4x8x8xf32>
    %47 = math.exp %46 : vector<4x8x8xf32>
    %cst_13 = arith.constant dense<0.000000e+00> : vector<4x8xf32>
    %48 = vector.multi_reduction <add>, %47, %cst_13 [2] : vector<4x8x8xf32> to vector<4x8xf32>
    %49 = vector.shape_cast %48 : vector<4x8xf32> to vector<4x8x1xf32>
    %50 = tpu.reciprocal %49 {approx = true} : vector<4x8x1xf32> -> vector<4x8x1xf32>
    %51 = vector.broadcast %50 : vector<4x8x1xf32> to vector<4x8x8xf32>
    %52 = arith.mulf %47, %51 : vector<4x8x8xf32>
    "tpu.trace_start"() <{level = 10 : i32, message = "hqk,hkd->hqd"}> : () -> ()
    %cst_14 = arith.constant dense<0.000000e+00> : vector<4x8x8xf32>
    %53 = tpu.matmul %52, %38, %cst_14 {dimension_numbers = #tpu.dot_dimension_numbers<[2], [1], [1], [2], [0, 0, 0, 1, 1, 2], [0], [0]>} : vector<4x8x8xf32>, vector<4x8x8xf32>, vector<4x8x8xf32> -> vector<4x8x8xf32>
    "tpu.trace_stop"() : () -> ()
    %54 = vector.extract_strided_slice %53 {offsets = [0, 0, 0], sizes = [1, 8, 8], strides = [1, 1, 1]} : vector<4x8x8xf32> to vector<1x8x8xf32>
    %55 = vector.shape_cast %54 : vector<1x8x8xf32> to vector<8x8xf32>
    %56 = vector.extract_strided_slice %53 {offsets = [1, 0, 0], sizes = [1, 8, 8], strides = [1, 1, 1]} : vector<4x8x8xf32> to vector<1x8x8xf32>
    %57 = vector.shape_cast %56 : vector<1x8x8xf32> to vector<8x8xf32>
    %58 = vector.extract_strided_slice %53 {offsets = [2, 0, 0], sizes = [1, 8, 8], strides = [1, 1, 1]} : vector<4x8x8xf32> to vector<1x8x8xf32>
    %59 = vector.shape_cast %58 : vector<1x8x8xf32> to vector<8x8xf32>
    %60 = vector.extract_strided_slice %53 {offsets = [3, 0, 0], sizes = [1, 8, 8], strides = [1, 1, 1]} : vector<4x8x8xf32> to vector<1x8x8xf32>
    %61 = vector.shape_cast %60 : vector<1x8x8xf32> to vector<8x8xf32>
    %62 = tpu.concatenate %55, %57, %59, %61 in 1 : vector<8x8xf32>, vector<8x8xf32>, vector<8x8xf32>, vector<8x8xf32> -> vector<8x32xf32>
    %c0_15 = arith.constant 0 : index
    %c0_16 = arith.constant 0 : index
    %c0_17 = arith.constant 0 : index
    %63 = vector.load %arg6[%c0_15, %c0_16, %c0_17] : memref<1x32x32xf32, #tpu.memory_space<vmem>>, vector<1x32x32xf32>
    %64 = vector.shape_cast %63 : vector<1x32x32xf32> to vector<32x32xf32>
    %cst_18 = arith.constant dense<0.000000e+00> : vector<8x32xf32>
    %65 = tpu.matmul %62, %64, %cst_18 {dimension_numbers = #tpu.dot_dimension_numbers<[1], [0], [0], [1], [0, 0, 1, 1], [], []>} : vector<8x32xf32>, vector<32x32xf32>, vector<8x32xf32> -> vector<8x32xf32>
    %c0_19 = arith.constant 0 : index
    %c0_20 = arith.constant 0 : index
    %c0_21 = arith.constant 0 : index
    %66 = vector.load %arg7[%c0_19, %c0_20, %c0_21] : memref<1x1x32xf32, #tpu.memory_space<vmem>>, vector<1x1x32xf32>
    %67 = vector.shape_cast %66 : vector<1x1x32xf32> to vector<1x32xf32>
    %68 = vector.broadcast %67 : vector<1x32xf32> to vector<8x32xf32>
    %69 = arith.addf %65, %68 : vector<8x32xf32>
    %70 = arith.addf %3, %69 : vector<8x32xf32>
    %c0_22 = arith.constant 0 : index
    %c0_23 = arith.constant 0 : index
    %c0_24 = arith.constant 0 : index
    %71 = vector.load %arg8[%c0_22, %c0_23, %c0_24] : memref<1x1x32xf32, #tpu.memory_space<vmem>>, vector<1x1x32xf32>
    %72 = vector.shape_cast %71 : vector<1x1x32xf32> to vector<1x32xf32>
    %c0_25 = arith.constant 0 : index
    %c0_26 = arith.constant 0 : index
    %c0_27 = arith.constant 0 : index
    %73 = vector.load %arg9[%c0_25, %c0_26, %c0_27] : memref<1x1x32xf32, #tpu.memory_space<vmem>>, vector<1x1x32xf32>
    %74 = vector.shape_cast %73 : vector<1x1x32xf32> to vector<1x32xf32>
    %cst_28 = arith.constant dense<0.000000e+00> : vector<8xf32>
    %75 = vector.multi_reduction <add>, %70, %cst_28 [1] : vector<8x32xf32> to vector<8xf32>
    %76 = vector.shape_cast %75 : vector<8xf32> to vector<8x1xf32>
    %cst_29 = arith.constant 3.200000e+01 : f32
    %77 = vector.broadcast %cst_29 : f32 to vector<8x1xf32>
    %78 = arith.divf %76, %77 : vector<8x1xf32>
    %79 = vector.broadcast %78 : vector<8x1xf32> to vector<8x32xf32>
    %80 = arith.subf %70, %79 : vector<8x32xf32>
    %81 = arith.mulf %80, %80 : vector<8x32xf32>
    %cst_30 = arith.constant dense<0.000000e+00> : vector<8xf32>
    %82 = vector.multi_reduction <add>, %81, %cst_30 [1] : vector<8x32xf32> to vector<8xf32>
    %83 = vector.shape_cast %82 : vector<8xf32> to vector<8x1xf32>
    %cst_31 = arith.constant 3.200000e+01 : f32
    %84 = vector.broadcast %cst_31 : f32 to vector<8x1xf32>
    %85 = arith.divf %83, %84 : vector<8x1xf32>
    %86 = vector.broadcast %78 : vector<8x1xf32> to vector<8x32xf32>
    %87 = arith.subf %70, %86 : vector<8x32xf32>
    %cst_32 = arith.constant 9.99999974E-6 : f32
    %88 = vector.broadcast %cst_32 : f32 to vector<8x1xf32>
    %89 = arith.addf %85, %88 : vector<8x1xf32>
    %90 = math.rsqrt %89 : vector<8x1xf32>
    %91 = vector.broadcast %90 : vector<8x1xf32> to vector<8x32xf32>
    %92 = arith.mulf %87, %91 : vector<8x32xf32>
    %93 = vector.broadcast %72 : vector<1x32xf32> to vector<8x32xf32>
    %94 = arith.mulf %92, %93 : vector<8x32xf32>
    %95 = vector.broadcast %74 : vector<1x32xf32> to vector<8x32xf32>
    %96 = arith.addf %94, %95 : vector<8x32xf32>
    %c0_33 = arith.constant 0 : index
    %c0_34 = arith.constant 0 : index
    %c0_35 = arith.constant 0 : index
    %97 = vector.load %arg10[%c0_33, %c0_34, %c0_35] : memref<1x32x64xf32, #tpu.memory_space<vmem>>, vector<1x32x64xf32>
    %98 = vector.shape_cast %97 : vector<1x32x64xf32> to vector<32x64xf32>
    %cst_36 = arith.constant dense<0.000000e+00> : vector<8x64xf32>
    %99 = tpu.matmul %96, %98, %cst_36 {dimension_numbers = #tpu.dot_dimension_numbers<[1], [0], [0], [1], [0, 0, 1, 1], [], []>} : vector<8x32xf32>, vector<32x64xf32>, vector<8x64xf32> -> vector<8x64xf32>
    %c0_37 = arith.constant 0 : index
    %c0_38 = arith.constant 0 : index
    %c0_39 = arith.constant 0 : index
    %100 = vector.load %arg11[%c0_37, %c0_38, %c0_39] : memref<1x1x64xf32, #tpu.memory_space<vmem>>, vector<1x1x64xf32>
    %101 = vector.shape_cast %100 : vector<1x1x64xf32> to vector<1x64xf32>
    %102 = vector.broadcast %101 : vector<1x64xf32> to vector<8x64xf32>
    %103 = arith.addf %99, %102 : vector<8x64xf32>
    %cst_40 = arith.constant 0.000000e+00 : f32
    %104 = vector.broadcast %cst_40 : f32 to vector<8x64xf32>
    %105 = arith.maximumf %103, %104 : vector<8x64xf32>
    %c0_41 = arith.constant 0 : index
    %c0_42 = arith.constant 0 : index
    %c0_43 = arith.constant 0 : index
    %106 = vector.load %arg12[%c0_41, %c0_42, %c0_43] : memref<1x64x32xf32, #tpu.memory_space<vmem>>, vector<1x64x32xf32>
    %107 = vector.shape_cast %106 : vector<1x64x32xf32> to vector<64x32xf32>
    %cst_44 = arith.constant dense<0.000000e+00> : vector<8x32xf32>
    %108 = tpu.matmul %105, %107, %cst_44 {dimension_numbers = #tpu.dot_dimension_numbers<[1], [0], [0], [1], [0, 0, 1, 1], [], []>} : vector<8x64xf32>, vector<64x32xf32>, vector<8x32xf32> -> vector<8x32xf32>
    %c0_45 = arith.constant 0 : index
    %c0_46 = arith.constant 0 : index
    %c0_47 = arith.constant 0 : index
    %109 = vector.load %arg13[%c0_45, %c0_46, %c0_47] : memref<1x1x32xf32, #tpu.memory_space<vmem>>, vector<1x1x32xf32>
    %110 = vector.shape_cast %109 : vector<1x1x32xf32> to vector<1x32xf32>
    %111 = vector.broadcast %110 : vector<1x32xf32> to vector<8x32xf32>
    %112 = arith.addf %108, %111 : vector<8x32xf32>
    %113 = arith.addf %96, %112 : vector<8x32xf32>
    %c0_48 = arith.constant 0 : index
    %c0_49 = arith.constant 0 : index
    %c0_50 = arith.constant 0 : index
    %114 = vector.load %arg14[%c0_48, %c0_49, %c0_50] : memref<1x1x32xf32, #tpu.memory_space<vmem>>, vector<1x1x32xf32>
    %115 = vector.shape_cast %114 : vector<1x1x32xf32> to vector<1x32xf32>
    %c0_51 = arith.constant 0 : index
    %c0_52 = arith.constant 0 : index
    %c0_53 = arith.constant 0 : index
    %116 = vector.load %arg15[%c0_51, %c0_52, %c0_53] : memref<1x1x32xf32, #tpu.memory_space<vmem>>, vector<1x1x32xf32>
    %117 = vector.shape_cast %116 : vector<1x1x32xf32> to vector<1x32xf32>
    %cst_54 = arith.constant dense<0.000000e+00> : vector<8xf32>
    %118 = vector.multi_reduction <add>, %113, %cst_54 [1] : vector<8x32xf32> to vector<8xf32>
    %119 = vector.shape_cast %118 : vector<8xf32> to vector<8x1xf32>
    %cst_55 = arith.constant 3.200000e+01 : f32
    %120 = vector.broadcast %cst_55 : f32 to vector<8x1xf32>
    %121 = arith.divf %119, %120 : vector<8x1xf32>
    %122 = vector.broadcast %121 : vector<8x1xf32> to vector<8x32xf32>
    %123 = arith.subf %113, %122 : vector<8x32xf32>
    %124 = arith.mulf %123, %123 : vector<8x32xf32>
    %cst_56 = arith.constant dense<0.000000e+00> : vector<8xf32>
    %125 = vector.multi_reduction <add>, %124, %cst_56 [1] : vector<8x32xf32> to vector<8xf32>
    %126 = vector.shape_cast %125 : vector<8xf32> to vector<8x1xf32>
    %cst_57 = arith.constant 3.200000e+01 : f32
    %127 = vector.broadcast %cst_57 : f32 to vector<8x1xf32>
    %128 = arith.divf %126, %127 : vector<8x1xf32>
    %129 = vector.broadcast %121 : vector<8x1xf32> to vector<8x32xf32>
    %130 = arith.subf %113, %129 : vector<8x32xf32>
    %cst_58 = arith.constant 9.99999974E-6 : f32
    %131 = vector.broadcast %cst_58 : f32 to vector<8x1xf32>
    %132 = arith.addf %128, %131 : vector<8x1xf32>
    %133 = math.rsqrt %132 : vector<8x1xf32>
    %134 = vector.broadcast %133 : vector<8x1xf32> to vector<8x32xf32>
    %135 = arith.mulf %130, %134 : vector<8x32xf32>
    %136 = vector.broadcast %115 : vector<1x32xf32> to vector<8x32xf32>
    %137 = arith.mulf %135, %136 : vector<8x32xf32>
    %138 = vector.broadcast %117 : vector<1x32xf32> to vector<8x32xf32>
    %139 = arith.addf %137, %138 : vector<8x32xf32>
    %c0_59 = arith.constant 0 : index
    %c0_60 = arith.constant 0 : index
    %140 = vector.load %arg16[%c0_59, %c0_60] : memref<8x32xf32, #tpu.memory_space<vmem>>, vector<8x32xf32>
    tpu.vector_store %arg16[%c0_59, %c0_60], %139 {strides = array<i32>} : memref<8x32xf32, #tpu.memory_space<vmem>>, vector<8x32xf32>,
    return
  }
  func.func @transform_0(%arg0: i32, %arg1: i32) -> (i32, i32) {
    %c0_i32 = arith.constant 0 : i32
    %c0_i32_0 = arith.constant 0 : i32
    return %arg0, %c0_i32 : i32, i32
  }
  func.func @transform_1(%arg0: i32, %arg1: i32) -> (i32, i32, i32) {
    %c0_i32 = arith.constant 0 : i32
    %c0_i32_0 = arith.constant 0 : i32
    %c0_i32_1 = arith.constant 0 : i32
    return %arg0, %c0_i32, %c0_i32_0 : i32, i32, i32
  }
  func.func @transform_2(%arg0: i32, %arg1: i32) -> (i32, i32, i32) {
    %c0_i32 = arith.constant 0 : i32
    %c0_i32_0 = arith.constant 0 : i32
    %c0_i32_1 = arith.constant 0 : i32
    return %arg1, %c0_i32, %c0_i32_0 : i32, i32, i32
  }
  func.func @transform_3(%arg0: i32, %arg1: i32) -> (i32, i32, i32) {
    %c0_i32 = arith.constant 0 : i32
    %c0_i32_0 = arith.constant 0 : i32
    %c0_i32_1 = arith.constant 0 : i32
    return %arg1, %c0_i32, %c0_i32_0 : i32, i32, i32
  }
  func.func @transform_4(%arg0: i32, %arg1: i32) -> (i32, i32, i32) {
    %c0_i32 = arith.constant 0 : i32
    %c0_i32_0 = arith.constant 0 : i32
    %c0_i32_1 = arith.constant 0 : i32
    return %arg1, %c0_i32, %c0_i32_0 : i32, i32, i32
  }
  func.func @transform_5(%arg0: i32, %arg1: i32) -> (i32, i32, i32) {
    %c0_i32 = arith.constant 0 : i32
    %c0_i32_0 = arith.constant 0 : i32
    %c0_i32_1 = arith.constant 0 : i32
    return %arg1, %c0_i32, %c0_i32_0 : i32, i32, i32
  }
  func.func @transform_6(%arg0: i32, %arg1: i32) -> (i32, i32, i32) {
    %c0_i32 = arith.constant 0 : i32
    %c0_i32_0 = arith.constant 0 : i32
    %c0_i32_1 = arith.constant 0 : i32
    return %arg1, %c0_i32, %c0_i32_0 : i32, i32, i32
  }
  func.func @transform_7(%arg0: i32, %arg1: i32) -> (i32, i32, i32) {
    %c0_i32 = arith.constant 0 : i32
    %c0_i32_0 = arith.constant 0 : i32
    %c0_i32_1 = arith.constant 0 : i32
    return %arg1, %c0_i32, %c0_i32_0 : i32, i32, i32
  }
  func.func @transform_8(%arg0: i32, %arg1: i32) -> (i32, i32, i32) {
    %c0_i32 = arith.constant 0 : i32
    %c0_i32_0 = arith.constant 0 : i32
    %c0_i32_1 = arith.constant 0 : i32
    return %arg1, %c0_i32, %c0_i32_0 : i32, i32, i32
  }
  func.func @transform_9(%arg0: i32, %arg1: i32) -> (i32, i32, i32) {
    %c0_i32 = arith.constant 0 : i32
    %c0_i32_0 = arith.constant 0 : i32
    %c0_i32_1 = arith.constant 0 : i32
    return %arg1, %c0_i32, %c0_i32_0 : i32, i32, i32
  }
  func.func @transform_10(%arg0: i32, %arg1: i32) -> (i32, i32, i32) {
    %c0_i32 = arith.constant 0 : i32
    %c0_i32_0 = arith.constant 0 : i32
    %c0_i32_1 = arith.constant 0 : i32
    return %arg1, %c0_i32, %c0_i32_0 : i32, i32, i32
  }
  func.func @transform_11(%arg0: i32, %arg1: i32) -> (i32, i32, i32) {
    %c0_i32 = arith.constant 0 : i32
    %c0_i32_0 = arith.constant 0 : i32
    %c0_i32_1 = arith.constant 0 : i32
    return %arg1, %c0_i32, %c0_i32_0 : i32, i32, i32
  }
  func.func @transform_12(%arg0: i32, %arg1: i32) -> (i32, i32, i32) {
    %c0_i32 = arith.constant 0 : i32
    %c0_i32_0 = arith.constant 0 : i32
    %c0_i32_1 = arith.constant 0 : i32
    return %arg1, %c0_i32, %c0_i32_0 : i32, i32, i32
  }
  func.func @transform_13(%arg0: i32, %arg1: i32) -> (i32, i32, i32) {
    %c0_i32 = arith.constant 0 : i32
    %c0_i32_0 = arith.constant 0 : i32
    %c0_i32_1 = arith.constant 0 : i32
    return %arg1, %c0_i32, %c0_i32_0 : i32, i32, i32
  }
  func.func @transform_14(%arg0: i32, %arg1: i32) -> (i32, i32) {
    %c0_i32 = arith.constant 0 : i32
    %c0_i32_0 = arith.constant 0 : i32
    return %arg0, %c0_i32 : i32, i32
  }
}

</mosaic_0001>

<bundles_post_ra>
// kernel: encoder_forward.1
= control target key start
LH: loop header
LB: loop body
LE: loop exit
PB: predicated region body
PF: predicated region fallthrough
CT: control target
= control target key end

     0   :  { %s2389_s29 = smov 0   ;;  %s2391_s30 = smov 0   ;;  %s2661_s0 = inlined_call_operand.vmem [shape: f32[16,32], index: 0, kind: input, shape index: {}, may-alias: {0,14}]   ;;  %s2662_s1 = inlined_call_operand.vmem [shape: f32[2,1,8], index: 1, kind: input, shape index: {}]   ;;  %s2663_s2 = inlined_call_operand.vmem [shape: f32[2,32,96], index: 2, kind: input, shape index: {}]   ;;  %s2664_s3 = inlined_call_operand.vmem [shape: f32[2,1,96], index: 3, kind: input, shape index: {}]   ;;  %s2665_s4 = inlined_call_operand.vmem [shape: f32[2,32,32], index: 4, kind: input, shape index: {}]   ;;  %s2666_s5 = inlined_call_operand.vmem [shape: f32[2,1,32], index: 5, kind: input, shape index: {}]   ;;  %s2667_s6 = inlined_call_operand.vmem [shape: f32[2,1,32], index: 6, kind: input, shape index: {}]   ;;  %s2668_s7 = inlined_call_operand.vmem [shape: f32[2,1,32], index: 7, kind: input, shape index: {}]   ;;  %s2669_s8 = inlined_call_operand.vmem [shape: f32[2,32,64], index: 8, kind: input, shape index: {}]   ;;  %s2670_s9 = inlined_call_operand.vmem [shape: f32[2,1,64], index: 9, kind: input, shape index: {}]   ;;  %s2671_s10 = inlined_call_operand.vmem [shape: f32[2,64,32], index: 10, kind: input, shape index: {}]   ;;  %s2672_s11 = inlined_call_operand.vmem [shape: f32[2,1,32], index: 11, kind: input, shape index: {}]   ;;  %s2673_s12 = inlined_call_operand.vmem [shape: f32[2,1,32], index: 12, kind: input, shape index: {}]   ;;  %s2674_s13 = inlined_call_operand.vmem [shape: f32[2,1,32], index: 13, kind: input, shape index: {}]   ;;  %s2675_s14 = inlined_call_operand.vmem [shape: f32[16,32], index: 14, kind: output, shape index: {}, may-alias: {0,14}]  }
   0x1   :  { %2680 = sst [smem:[#allocation8_spill]] %s2661_s0  ;;  %s2393_s15 = smov 0  }
   0x2   :  { %2681 = sst [smem:[#allocation9_spill]] %s2662_s1  ;;  %s2395_s16 = smov 0  }
   0x3   :  { %2682 = sst [smem:[#allocation10_spill]] %s2663_s2  ;;  %s2397_s17 = smov 0  }
   0x4   :  { %2683 = sst [smem:[#allocation11_spill]] %s2665_s4 }
   0x5   :  { %2684 = sst [smem:[#allocation12_spill]] %s2668_s7 }
   0x6   :  { %2685 = sst [smem:[#allocation13_spill]] %s2669_s8 }
   0x7   :  { %2686 = sst [smem:[#allocation14_spill]] %s2670_s9 }
   0x8   :  { %2687 = sst [smem:[#allocation15_spill]] %s2673_s12 }
   0x9   :  { %2688 = sst [smem:[#allocation16_spill]] %s2674_s13 }
   0xa   :  { %2689 = sst [smem:[#allocation17_spill]] %s2675_s14 }
   0xb LB: > { %2690 = sst [smem:[#allocation2_spill]] %s2279_s29  ;;  %s33_s18 = sadd.s32 1, %s2287_s15  ;;  %s2295_s17 = sphi %s2397_s17, %s24_s17   ;;  %s2291_s16 = sphi %s2395_s16, %s2722_s16   ;;  %s2287_s15 = sphi %s2393_s15, %s2721_s15   ;;  %s2283_s30 = sphi %s2391_s30, %s2720_s30   ;;  %s2279_s29 = sphi %s2389_s29, %s2719_s29  }
   0xc   : > { %2691 = sst [smem:[#allocation3_spill]] %s2287_s15  ;;  %s36_s19 = sadd.s32 1, %s2291_s16 }
   0xd   : > { %2692 = sst [smem:[#allocation4_spill]] %s2291_s16  ;;  %p34_p0 = scmp.ge.s32.totalorder %s33_s18, 2 }
   0xe   : > { %2693 = sst [smem:[#allocation5_spill]] %s2295_s17  ;;  %p1975_p1 = scmp.ge.s32.totalorder %s2295_s17, 1 }
   0xf   : > { %p535_p2 = scmp.lt.s32.totalorder %s2295_s17, 5  ;;  %s2724_s18 = smov (%p34_p0, %s33_s18), 0 }
  0x10   : > { %2694 = sst [smem:[#allocation6_spill]] %s2724_s18  ;;  %s2726_s19 = smov (!%p34_p0, %s36_s19), %s2291_s16 }
  0x11   : > { %p536_p3 = pnand %p1975_p1, %p535_p2  ;;  %p38_p4 = scmp.ge.s32.totalorder %s2726_s19, 2 }
  0x12   : > { %p626_p5 = scmp.lt.s32.totalorder (!%p536_p3), %s2283_s30, 1  ;;  %p633_p6 = scmp.lt.s32.totalorder (!%p536_p3), %s2279_s29, 1 }
  0x13   : > { %s2728_s19 = smov (%p38_p4, %s2726_s19), 0  ;;  %539 = sbr.rel (%p536_p3) target bundleno = 2525 (0x9dd), region = 76 }
  0x14   : > { %2695 = sst [smem:[#allocation7_spill]] %s2728_s19  ;;  %s2697_s0 = sld [smem:[#allocation8_spill]] (!%p536_p3) }
  0x15   : > { %s2698_s2 = sld [smem:[#allocation10_spill]] (!%p536_p3)  ;;  %s2699_s4 = sld [smem:[#allocation11_spill]] (!%p536_p3) }
  0x16   : > { %s2701_s8 = sld [smem:[#allocation13_spill]] (!%p536_p3)  ;;  %s2703_s19 = sld [smem:[#allocation15_spill]] (!%p536_p3) }
  0x17   : > { %s2706_s22 = sld [smem:[#allocation2_spill]] (!%p536_p3) }
  0x1a   : > { %s2730_s30 = smov (!%p626_p5, %s2283_s30), 1 }
  0x1b   : > { %s2425_s20 = scalar_select %p633_p6, %s2279_s29, 1 }
  0x1c   : > { %s1976_s21 = sshll.u32 %s2730_s30, 3  ;;  %s2705_s29 = sld [smem:[#allocation17_spill]] }
  0x1d   : > { %s629_s27 = scalar_lea.vmem %s2697_s0, %s1976_s21  ;;  %s2014_s28 = sshll.u32 %s2425_s20, 5 }
  0x1e   : > { %s637_s16 = scalar_lea.vmem %s2698_s2, %s2014_s28  ;;  %s2446_s12 = scalar_lea.vmem %s2699_s4, %s2014_s28 }
  0x1f   : > { %s2463_s17 = scalar_lea.vmem %s2701_s8, %s2014_s28  ;;  %s2017_s4 = sshll.u32 %s2425_s20, 6 }
  0x20   : > { %s670_s24 = scalar_lea.vmem %s2672_s11, %s2425_s20  ;;  %s2477_s0 = scalar_lea.vmem %s2671_s10, %s2017_s4 }
  0x21   : > { %s673_s2 = scalar_lea.vmem %s2703_s19, %s2425_s20  ;;  %s2704_s8 = sld [smem:[#allocation16_spill]] }
  0x22   : > { %s2490_s9 = scalar_lea.vmem %s2705_s29, %s1976_s21  ;;  %p1986_p7 = scmp.ne.s32.totalorder %s2706_s22, 0 }
  0x23   : > { %v685_v0 = vld [vmem:[%s629_s27] sm:$0xff] (!%p1986_p7)  ;;  %vm686_vm0 = vcmask (!%p1986_p7), 261120  }
  0x24   : > { %684 = sbr.rel (%p1986_p7) target bundleno = 43 (0x2b), region = 80  ;;  %687 = vst.msk [vmem:[%s2490_s9] sm:$0xff] (!%p1986_p7), %vm686_vm0, %v685_v0 }
  0x27   : > { %s676_s7 = scalar_lea.vmem %s2704_s8, %s2425_s20 }
  0x2b PF: > { %v689_v1 = vld [vmem:[%s637_s16] sm:$0xff]  ;;  %v690_v2 = vld [vmem:[%s637_s16 + $0x8] sm:$0xff]  ;;  %v691_v3 = vld [vmem:[%s637_s16 + $0x10] sm:$0xff]  ;;  %v2297_v4 = vmov 0.0|0.0   ;;  %vm2298_vm1 = vmmov 0   ;;  %v2299_v7 = vmov 0.0   ;;  %s2707_s29 = scalar_lea.vmem %s2664_s3, %s2425_s20 }
  0x2c   : > { %2150 = vmatprep.subr.bf16.mxu1 %v2297_v4  ;;  %v2151_v5 = vpack.c.bf16 %v690_v2, %v689_v1  ;;  %v692_v6 = vld [vmem:[%s637_s16 + $0x18] sm:$0xff]  ;;  %2066 = vmatprep.mubr.msk.f32.mxu1 %vm2298_vm1, %v2299_v7  ;;  %v2502_v9 = vld [vmem:[%s2490_s9] sm:$0xff]  ;;  %vm700_vm2 = vcmask 261120   ;;  %s2300_s16 = smov 120   ;;  %s2301_s21 = smov 96   ;;  %vm808_vm3 = vcmask 64512  }
  0x2d   : > { %2079 = vmatprep.subr.mxu0 %v2299_v7  ;;  %2081 = vmatprep.mubr.msk.f32.mxu0 %vm2298_vm1, %v2299_v7  ;;  %v2154_v8 = vpack.c.bf16 %v692_v6, %v691_v3  ;;  %v1987_v10 = vld [vmem:[%s2707_s29] ss:$0 sm:$0xff]  ;;  %s2302_s27 = smov 80   ;;  %s2303_s19 = smov 88   ;;  %vm1454_vm4 = vcmask 130048   ;;  %vm1456_vm5 = vcmask 195584  }
  0x2e   : > { %2152 = vmatpush3.bf16.msra.mxu1 %v2151_v5  ;;  %s2304_s23 = smov 112   ;;  %s2305_s25 = smov 72   ;;  %vm1673_vm6 = vcmask 523264  }
  0x2f   : > { %2153 = vmatprep.subr.bf16.mxu1 %v2297_v4  ;;  %s2306_s26 = smov 104   ;;  %s2708_s28 = sld [smem:[#allocation9_spill]] }
  0x30   : > { %s2308_s13 = smov 64   ;;  %s2309_s14 = smov 48  }
  0x31   : > { %s2310_s22 = smov 40   ;;  %s2311_s4 = smov 8  }
  0x32   : > { %2155 = vmatpush3.bf16.msra.mxu1 %v2154_v8  ;;  %s2312_s8 = smov 16   ;;  %s2313_s29 = smov 24  }
  0x33   : > { %2069 = vmatprep.subr.mxu1 %v2299_v7 }
  0x35   : > { %2067 = vmatmul.mubr.msk.f32.vlgmr.msra.gmra.mrb[0].mxu1 %vm700_vm2, %v2502_v9  ;;  %s2709_s15 = scalar_lea.vmem %s2708_s28, %s2730_s30  ;;  %s2307_s30 = smov 56  }
  0x36   : > { %2071 = vmatprep.mubr.msk.f32.mxu1 %vm2298_vm1, %v2299_v7  ;;  %v1989_v21 = vld [vmem:[%s2709_s15] ss:$0 sm:$0xff]  ;;  %s2714_s15 = sld [smem:[#allocation14_spill]] }
 0x108   : > { %v770_v11 = vpop.f32.mrb[0].mxu1 }
 0x109   : > { %v2514_v12 = vadd.f32 %v1987_v10, %v770_v11  ;;  %v2068_v13 = vpop.f32.mrb[1].mxu1 }
 0x10a   : > { %v1458_v13 = vld [vmem:[%s2446_s12] sm:$0xff] }
 0x10b   : > { %775 = vrot.lane.b32.xlu1 %v2514_v12, %s2300_s16  ;;  %781 = vrot.lane.b32.xlu0 %v2514_v12, %s2301_s21  ;;  %s2710_s21 = scalar_lea.vmem %s2666_s5, %s2425_s20 }
 0x10f   : > { %785 = vrot.lane.b32.xlu1 %v2514_v12, %s2302_s27  ;;  %783 = vrot.lane.b32.xlu0 %v2514_v12, %s2303_s19  ;;  %s2711_s19 = scalar_lea.vmem %s2667_s6, %s2425_s20 }
 0x113   : > { %777 = vrot.lane.b32.xlu1 %v2514_v12, %s2304_s23  ;;  %787 = vrot.lane.b32.xlu0 %v2514_v12, %s2305_s25 }
 0x117   : > { %779 = vrot.lane.b32.xlu0 %v2514_v12, %s2306_s26  ;;  %s2712_s26 = sld [smem:[#allocation12_spill]] }
 0x11d   : > { %s2713_s1 = scalar_lea.vmem %s2712_s26, %s2425_s20 }
 0x17d   : > { %v776_v14 = vpop.permute.xlu1 %775  ;;  %v782_v15 = vpop.permute.xlu0 %781 }
 0x17e   : > { %2070 = vmatpush3.xpose.msk.msra.mxu1 %vm808_vm3, %v782_v15 }
 0x17f   : > { %2074 = vmatprep.subr.mxu1 %v2299_v7 }
 0x181   : > { %v786_v16 = vpop.permute.xlu1 %785  ;;  %2072 = vmatmul.mubr.msk.f32.vlgmr.msra.gmra.mrb[2].mxu1 %vm808_vm3, %v2514_v12  ;;  %v784_v17 = vpop.permute.xlu0 %783 }
 0x182   : > { %2075 = vmatpush3.xpose.msk.msra.mxu1 %vm808_vm3, %v784_v17  ;;  %2080 = vmatpush3.xpose.msk.msra.mxu0 %vm808_vm3, %v786_v16  ;;  %v1460_v16 = vld [vmem:[%s2446_s12 + $0x10] sm:$0xff]  ;;  %v1461_v17 = vld [vmem:[%s2446_s12 + $0x18] sm:$0xff] }
 0x183   : > { %2076 = vmatprep.mubr.msk.f32.mxu1 %vm2298_vm1, %v2299_v7  ;;  %2084 = vmatprep.subr.mxu1 %v2299_v7 }
 0x184   : > { %2089 = vmatprep.subr.mxu0 %v2299_v7 }
 0x185   : > { %v778_v18 = vpop.permute.xlu1 %777  ;;  %2077 = vmatmul.mubr.msk.f32.vlgmr.msra.gmra.mrb[4].mxu1 %vm808_vm3, %v776_v14  ;;  %v788_v19 = vpop.permute.xlu0 %787  ;;  %v1459_v14 = vld [vmem:[%s2446_s12 + $0x8] sm:$0xff] }
 0x186   : > { %2082 = vmatmul.mubr.msk.f32.vlgmr.msra.gmra.mrb[0].mxu0 %vm808_vm3, %v778_v18  ;;  %2085 = vmatpush3.xpose.msk.msra.mxu1 %vm808_vm3, %v788_v19  ;;  %v2157_v15 = vpack.c.bf16 %v1459_v14, %v1458_v13  ;;  %v2160_v18 = vpack.c.bf16 %v1461_v17, %v1460_v16 }
 0x187   : > { %2086 = vmatprep.mubr.msk.f32.mxu1 %vm2298_vm1, %v2299_v7  ;;  %2094 = vmatprep.subr.mxu1 %v2299_v7 }
 0x188   : > { %2091 = vmatprep.mubr.msk.f32.mxu0 %vm2298_vm1, %v2299_v7 }
 0x189   : > { %v780_v20 = vpop.permute.xlu0 %779 }
 0x18a   : > { %2087 = vmatmul.mubr.msk.f32.vlgmr.msra.gmra.mrb[6].mxu1 %vm808_vm3, %v780_v20 }
 0x18b   : > { %2096 = vmatprep.mubr.msk.f32.mxu1 %vm2298_vm1, %v2299_v7 }
 0x254   : > { %v879_v22 = vpop.f32.mrb[2].mxu1 }
 0x255   : > { %v880_v23 = vadd.f32 %v1989_v21, %v879_v22  ;;  %v2073_v24 = vpop.f32.mrb[3].mxu1 }
 0x257   : > { %v1105_v25 = vsel %vm808_vm3, %v880_v23, -inf }
 0x258   : > { %1106 = vmax.xlane.f32.xlu1 %v1105_v25  ;;  %v953_v26 = vpop.f32.mrb[4].mxu1 }
 0x259   : > { %v954_v27 = vadd.f32 %v1989_v21, %v953_v26  ;;  %v2078_v28 = vpop.f32.mrb[5].mxu1  ;;  %v1027_v29 = vpop.f32.mrb[0].mxu0 }
 0x25a   : > { %v2083_v30 = vpop.f32.mrb[1].mxu0  ;;  %v1028_v31 = vadd.f32 %v1989_v21, %v1027_v29 }
 0x25b   : > { %v1108_v32 = vsel %vm808_vm3, %v954_v27, -inf }
 0x25c   : > { %1109 = vmax.xlane.f32.xlu0 %v1108_v32  ;;  %v1111_v36 = vsel %vm808_vm3, %v1028_v31, -inf }
 0x25d   : > { %v1101_v33 = vpop.f32.mrb[6].mxu1 }
 0x25e   : > { %v1102_v34 = vadd.f32 %v1989_v21, %v1101_v33  ;;  %v2088_v35 = vpop.f32.mrb[7].mxu1  ;;  %v2002_v33 = vld [vmem:[%s2710_s21] ss:$0 sm:$0xff] }
 0x260   : > { %1112 = vmax.xlane.f32.xlu0 %v1111_v36  ;;  %v1114_v37 = vsel %vm808_vm3, %v1102_v34, -inf }
 0x261   : > { %1115 = vmax.xlane.f32.xlu1 %v1114_v37 }
 0x272   : > { %792 = vrot.lane.b32.xlu1 %v2514_v12, %s2307_s30  ;;  %s2715_s30 = scalar_lea.vmem %s2714_s15, %s2425_s20 }
 0x276   : > { %789 = vrot.lane.b32.xlu0 %v2514_v12, %s2308_s13 }
 0x2e5   : > { %v1107_v38 = vpop.xlane.xlu1 %1106 }
 0x2e6   : > { %v1117_v39 = vsub.f32 %v880_v23, %v1107_v38 }
 0x2e8   : > { %v1121_v40 = vmul.f32 1.442695, %v1117_v39 }
 0x2e9   : > { %v1110_v41 = vpop.xlane.xlu0 %1109 }
 0x2ea   : > { %2237 = vpow2.f32 %v1121_v40  ;;  %v1118_v42 = vsub.f32 %v954_v27, %v1110_v41 }
 0x2ec   : > { %v1123_v43 = vmul.f32 1.442695, %v1118_v42 }
 0x2ed   : > { %v1113_v44 = vpop.xlane.xlu0 %1112 }
 0x2ee   : > { %2239 = vpow2.f32 %v1123_v43  ;;  %v1119_v45 = vsub.f32 %v1028_v31, %v1113_v44  ;;  %v1116_v46 = vpop.xlane.xlu1 %1115  ;;  %v1573_v43 = vld [vmem:[%s2463_s17] sm:$0xff]  ;;  %v1574_v44 = vld [vmem:[%s2463_s17 + $0x8] sm:$0xff] }
 0x2ef   : > { %v1120_v47 = vsub.f32 %v1102_v34, %v1116_v46  ;;  %v1576_v46 = vld [vmem:[%s2463_s17 + $0x18] sm:$0xff] }
 0x2f0   : > { %v1125_v48 = vmul.f32 1.442695, %v1119_v45  ;;  %v2163_v45 = vpack.c.bf16 %v1574_v44, %v1573_v43 }
 0x2f1   : > { %v1127_v49 = vmul.f32 1.442695, %v1120_v47  ;;  %v790_v50 = vpop.permute.xlu0 %789 }
 0x2f2   : > { %2241 = vpow2.f32 %v1125_v48  ;;  %2090 = vmatpush3.msra.mxu0 %v790_v50  ;;  %v793_v51 = vpop.permute.xlu1 %792  ;;  %v1658_v48 = vld [vmem:[%s2477_s0] sm:$0xff]  ;;  %v1660_v50 = vld [vmem:[%s2477_s0 + $0x10] sm:$0xff] }
 0x2f3   : > { %2243 = vpow2.f32 %v1127_v49  ;;  %2095 = vmatpush3.msra.mxu1 %v793_v51  ;;  %2099 = vmatprep.subr.mxu0 %v2299_v7  ;;  %v1659_v49 = vld [vmem:[%s2477_s0 + $0x8] sm:$0xff] }
 0x2f4   : > { %v2238_v52 = vpop.eup %2237  ;;  %2104 = vmatprep.subr.mxu1 %v2299_v7  ;;  %v2169_v51 = vpack.c.bf16 %v1659_v49, %v1658_v48 }
 0x2f5   : > { %v1129_v53 = vsel %vm808_vm3, %v2238_v52, 0.0 }
 0x2f6   : > { %1130 = vadd.xlane.f32.xlu0 %v1129_v53 }
 0x2f8   : > { %v2240_v54 = vpop.eup %2239 }
 0x2f9   : > { %v1132_v55 = vsel %vm808_vm3, %v2240_v54, 0.0 }
 0x2fa   : > { %1133 = vadd.xlane.f32.xlu1 %v1132_v55  ;;  %v1663_v55 = vld [vmem:[%s2477_s0 + $0x28] sm:$0xff] }
 0x2fc   : > { %v2242_v56 = vpop.eup %2241 }
 0x2fd   : > { %v2244_v57 = vpop.eup %2243  ;;  %v1135_v58 = vsel %vm808_vm3, %v2242_v56, 0.0 }
 0x2fe   : > { %1136 = vadd.xlane.f32.xlu0 %v1135_v58  ;;  %v1138_v59 = vsel %vm808_vm3, %v2244_v57, 0.0 }
 0x2ff   : > { %1139 = vadd.xlane.f32.xlu1 %v1138_v59 }
 0x310   : > { %795 = vrot.lane.b32.xlu1 %v2514_v12, %s2309_s14 }
 0x314   : > { %798 = vrot.lane.b32.xlu0 %v2514_v12, %s2310_s22 }
 0x383   : > { %v1131_v60 = vpop.xlane.xlu0 %1130 }
 0x384   : > { %2245 = vrcp.f32 %v1131_v60 }
 0x387   : > { %v1134_v61 = vpop.xlane.xlu1 %1133 }
 0x388   : > { %2247 = vrcp.f32 %v1134_v61  ;;  %v2004_v61 = vld [vmem:[%s2711_s19] ss:$0 sm:$0xff] }
 0x38b   : > { %v1137_v62 = vpop.xlane.xlu0 %1136 }
 0x38c   : > { %2249 = vrcp.f32 %v1137_v62  ;;  %v1140_v63 = vpop.xlane.xlu1 %1139 }
 0x38d   : > { %2251 = vrcp.f32 %v1140_v63  ;;  %v2005_v63 = vld [vmem:[%s2713_s1] ss:$0 sm:$0xff] }
 0x38e   : > { %v2246_v0 = vpop.eup %2245 }
 0x38f   : > { %v1145_v1 = vmul.f32 %v2246_v0, %v2238_v52  ;;  %v799_v6 = vpop.permute.xlu0 %798  ;;  %v1661_v52 = vld [vmem:[%s2477_s0 + $0x18] sm:$0xff] }
 0x390   : > { %v796_v2 = vpop.permute.xlu1 %795  ;;  %v2172_v53 = vpack.c.bf16 %v1661_v52, %v1660_v50 }
 0x391   : > { %2092 = vmatmul.mubr.msk.f32.vlgmr.msra.gmra.mrb[2].mxu0 %vm808_vm3, %v1145_v1  ;;  %v1664_v1 = vld [vmem:[%s2477_s0 + $0x30] sm:$0xff] }
 0x392   : > { %v2248_v3 = vpop.eup %2247  ;;  %2100 = vmatpush3.msra.mxu0 %v796_v2  ;;  %2101 = vmatprep.mubr.msk.f32.mxu0 %vm2298_vm1, %v2299_v7  ;;  %v1665_v2 = vld [vmem:[%s2477_s0 + $0x38] sm:$0xff] }
 0x393   : > { %v1146_v5 = vmul.f32 %v2248_v3, %v2240_v54  ;;  %2156 = vmatprep.subr.bf16.mxu0 %v2297_v4  ;;  %v1662_v54 = vld [vmem:[%s2477_s0 + $0x20] sm:$0xff]  ;;  %v2178_v3 = vpack.c.bf16 %v1665_v2, %v1664_v1 }
 0x395   : > { %2097 = vmatmul.mubr.msk.f32.vlgmr.msra.gmra.mrb[8].mxu1 %vm808_vm3, %v1146_v5  ;;  %v2006_v5 = vld [vmem:[%s2715_s30] ss:$0 sm:$0xff] }
 0x396   : > { %v2250_v8 = vpop.eup %2249  ;;  %2105 = vmatpush3.msra.mxu1 %v799_v6  ;;  %2106 = vmatprep.mubr.msk.f32.mxu1 %vm2298_vm1, %v2299_v7 }
 0x397   : > { %v2252_v10 = vpop.eup %2251  ;;  %v1147_v11 = vmul.f32 %v2250_v8, %v2242_v56  ;;  %2162 = vmatprep.subr.bf16.mxu1 %v2297_v4  ;;  %v2175_v56 = vpack.c.bf16 %v1663_v55, %v1662_v54 }
 0x398   : > { %v1148_v12 = vmul.f32 %v2252_v10, %v2244_v57 }
 0x399   : > { %2102 = vmatmul.mubr.msk.f32.vlgmr.msra.gmra.mrb[4].mxu0 %vm808_vm3, %v1147_v11 }
 0x39a   : > { %2107 = vmatmul.mubr.msk.f32.vlgmr.msra.gmra.mrb[10].mxu1 %vm808_vm3, %v1148_v12  ;;  %2117 = vmatprep.mubr.msk.f32.mxu0 %vm2298_vm1, %v2299_v7  ;;  %v2008_v12 = vld [vmem:[%s670_s24] ss:$0 sm:$0xff] }
 0x39b   : > { %2128 = vmatprep.mubr.msk.f32.mxu1 %vm2298_vm1, %v2299_v7  ;;  %2158 = vmatpush3.bf16.msra.mxu0 %v2157_v15 }
 0x39c   : > { %2159 = vmatprep.subr.bf16.mxu0 %v2297_v4  ;;  %2164 = vmatpush3.bf16.msra.mxu1 %v2163_v45 }
 0x39d   : > { %2165 = vmatprep.subr.bf16.mxu1 %v2297_v4 }
 0x39f   : > { %2161 = vmatpush3.bf16.msra.mxu0 %v2160_v18 }
 0x3a0   : > { %2168 = vmatprep.subr.bf16.mxu0 %v2297_v4 }
 0x464   : > { %v1218_v19 = vpop.f32.mrb[2].mxu0 }
 0x465   : > { %v2093_v20 = vpop.f32.mrb[3].mxu0 }
 0x468   : > { %v1291_v21 = vpop.f32.mrb[8].mxu1 }
 0x469   : > { %1442 = vrot.lane.b32.xlu1 %v1291_v21, %s2311_s4  ;;  %v2098_v22 = vpop.f32.mrb[9].mxu1 }
 0x46c   : > { %v1364_v23 = vpop.f32.mrb[4].mxu0 }
 0x46d   : > { %1446 = vrot.lane.b32.xlu0 %v1364_v23, %s2312_s8  ;;  %v2103_v24 = vpop.f32.mrb[5].mxu0  ;;  %v1437_v25 = vpop.f32.mrb[10].mxu1 }
 0x46e   : > { %1450 = vrot.lane.b32.xlu1 %v1437_v25, %s2313_s29  ;;  %v2108_v26 = vpop.f32.mrb[11].mxu1 }
 0x4db   : > { %v1443_v27 = vpop.permute.xlu1 %1442 }
 0x4dc   : > { %v1453_v28 = vsel %vm808_vm3, %v1218_v19, %v1443_v27  ;;  %v2010_v27 = vld [vmem:[%s673_s2] ss:$0 sm:$0xff] }
 0x4df   : > { %v1447_v29 = vpop.permute.xlu0 %1446 }
 0x4e0   : > { %v1455_v30 = vsel %vm1454_vm4, %v1453_v28, %v1447_v29  ;;  %v1451_v31 = vpop.permute.xlu1 %1450  ;;  %v2011_v29 = vld [vmem:[%s676_s7] ss:$0 sm:$0xff] }
 0x4e1   : > { %v1457_v32 = vsel %vm1456_vm5, %v1455_v30, %v1451_v31 }
 0x4e2   : > { %2118 = vmatmul.mubr.msk.f32.vlgmr.msra.gmra.mrb[6].mxu0 %vm700_vm2, %v1457_v32 }
 0x4e3   : > { %2147 = vmatprep.mubr.msk.f32.mxu0 %vm2298_vm1, %v2299_v7  ;;  %2170 = vmatpush3.bf16.msra.mxu0 %v2169_v51 }
 0x4e4   : > { %2171 = vmatprep.subr.bf16.mxu0 %v2297_v4 }
 0x4e7   : > { %2173 = vmatpush3.bf16.msra.mxu0 %v2172_v53 }
 0x4e8   : > { %2174 = vmatprep.subr.bf16.mxu0 %v2297_v4 }
 0x4eb   : > { %2176 = vmatpush3.bf16.msra.mxu0 %v2175_v56 }
 0x4ec   : > { %2177 = vmatprep.subr.bf16.mxu0 %v2297_v4 }
 0x4ef   : > { %2179 = vmatpush3.bf16.msra.mxu0 %v2178_v3 }
 0x5b5   : > { %v1538_v34 = vpop.f32.mrb[6].mxu0 }
 0x5b6   : > { %v1539_v35 = vadd.f32 %v2002_v33, %v1538_v34  ;;  %v2119_v36 = vpop.f32.mrb[7].mxu0 }
 0x5b8   : > { %v1542_v37 = vadd.f32 %v1539_v35, %v2502_v9  ;;  %v1575_v9 = vld [vmem:[%s2463_s17 + $0x10] sm:$0xff] }
 0x5b9   : > { %v2166_v47 = vpack.c.bf16 %v1576_v46, %v1575_v9 }
 0x5ba   : > { %v1545_v38 = vsel %vm700_vm2, %v1542_v37, 0.0 }
 0x5bb   : > { %1546 = vadd.xlane.f32.xlu0 %v1545_v38  ;;  %2167 = vmatpush3.bf16.msra.mxu1 %v2166_v47 }
 0x648   : > { %v1547_v39 = vpop.xlane.xlu0 %1546 }
 0x649   : > { %v1549_v40 = vmul.f32 0.03125, %v1547_v39 }
 0x64b   : > { %v1550_v7 = vsub.f32 %v1542_v37, %v1549_v40 }
 0x64d   : > { %v1551_v41 = vmul.f32 %v1550_v7, %v1550_v7 }
 0x64f   : > { %v1552_v42 = vsel %vm700_vm2, %v1551_v41, 0.0 }
 0x650   : > { %1553 = vadd.xlane.f32.xlu1 %v1552_v42 }
 0x6dd   : > { %v1554_v57 = vpop.xlane.xlu1 %1553 }
 0x6de   : > { %v1555_v58 = vmul.f32 0.03125, %v1554_v57 }
 0x6e0   : > { %v1556_v59 = vadd.f32 1e-05, %v1555_v58 }
 0x6e2   : > { %2253 = vrsqrt.f32 %v1556_v59 }
 0x6ec   : > { %v2254_v60 = vpop.eup %2253 }
 0x6ed   : > { %v1558_v62 = vmul.f32 %v2254_v60, %v1550_v7 }
 0x6ef   : > { %v1565_v0 = vmul.f32 %v2004_v61, %v1558_v62 }
 0x6f1   : > { %v1572_v4 = vadd.f32 %v2005_v63, %v1565_v0 }
 0x6f3   : > { %2129 = vmatmul.mubr.msk.f32.vlgmr.msra.gmra.mrb[12].mxu1 %vm700_vm2, %v1572_v4 }
 0x7c6   : > { %v1653_v6 = vpop.f32.mrb[12].mxu1 }
 0x7c7   : > { %v1654_v8 = vadd.f32 %v2006_v5, %v1653_v6  ;;  %v2130_v10 = vpop.f32.mrb[13].mxu1 }
 0x7c9   : > { %v1657_v11 = vmax.f32 %v1654_v8, 0.0 }
 0x7cb   : > { %2148 = vmatmul.mubr.msk.f32.vlgmr.msra.gmra.mrb[8].mxu0 %vm1673_vm6, %v1657_v11 }
 0x89e   : > { %v1743_v13 = vpop.f32.mrb[8].mxu0 }
 0x89f   : > { %v1744_v14 = vadd.f32 %v2008_v12, %v1743_v13  ;;  %v2149_v15 = vpop.f32.mrb[9].mxu0 }
 0x8a1   : > { %v1747_v16 = vadd.f32 %v1744_v14, %v1572_v4 }
 0x8a3   : > { %v1750_v17 = vsel %vm700_vm2, %v1747_v16, 0.0 }
 0x8a4   : > { %1751 = vadd.xlane.f32.xlu0 %v1750_v17 }
 0x931   : > { %v1752_v18 = vpop.xlane.xlu0 %1751 }
 0x932   : > { %v1753_v19 = vmul.f32 0.03125, %v1752_v18 }
 0x934   : > { %v1754_v20 = vsub.f32 %v1747_v16, %v1753_v19 }
 0x936   : > { %v1755_v21 = vmul.f32 %v1754_v20, %v1754_v20 }
 0x938   : > { %v1756_v22 = vsel %vm700_vm2, %v1755_v21, 0.0 }
 0x939   : > { %1757 = vadd.xlane.f32.xlu0 %v1756_v22 }
 0x9c6   : > { %v1758_v23 = vpop.xlane.xlu0 %1757 }
 0x9c7   : > { %v1759_v24 = vmul.f32 0.03125, %v1758_v23 }
 0x9c9   : > { %v1760_v25 = vadd.f32 1e-05, %v1759_v24 }
 0x9cb   : > { %2255 = vrsqrt.f32 %v1760_v25 }
 0x9d5   : > { %v2256_v26 = vpop.eup %2255 }
 0x9d6   : > { %v1762_v28 = vmul.f32 %v2256_v26, %v1754_v20 }
 0x9d8   : > { %v1769_v30 = vmul.f32 %v2010_v27, %v1762_v28 }
 0x9da   : > { %v1776_v31 = vadd.f32 %v2011_v29, %v1769_v30 }
 0x9dc   : > { %1777 = vst.msk [vmem:[%s2490_s9] sm:$0xff] %vm700_vm2, %v1776_v31 }
 0x9dd PF: > { %s2718_s12 = sld [smem:[#allocation5_spill]]  ;;  %s2719_s29 = sld [smem:[#allocation3_spill]] }
 0x9de   : > { %s2720_s30 = sld [smem:[#allocation4_spill]]  ;;  %s2721_s15 = sld [smem:[#allocation6_spill]] }
 0x9df   : > { %s2722_s16 = sld [smem:[#allocation7_spill]] }
 0x9e3   : > { %s24_s17 = sadd.s32 1, %s2718_s12  }
 0x9e4   : > { %p21_p8 = scmp.ge.s32.totalorder %s24_s17, 6  }
 0x9e6   :  { %23 = sbr.rel (!%p21_p8) target bundleno = 11 (0xb), region = 149 }

</bundles_post_ra>
